<compile_context>
chip_gen: v5e
topology: v5e:2x2
jax: 0.10.0
libtpu: 0.0.40
codegen_flags: <defaults>
</compile_context>

<pallas_src>
import functools

import jax
import jax.numpy as jnp
from jax.experimental import pallas as pl
from jax.experimental.pallas import tpu as pltpu

LANES = 128                    # lane width (last dim)
REDUCE_MAX_BLOCK_ROWS = 8192   # 2 streams * 2 bufs * 4 MiB = 16 MiB (f32)
MAP_MAX_BLOCK_ROWS = 4096      # 3 streams * 2 bufs * 2 MiB = 12 MiB (f32)
VMEM_LIMIT_BYTES = 32 * 1024 * 1024


def _qfocal_elementwise(x, y, gamma, alpha, *, in_kernel):
    """Elementwise quality-focal-loss term, f32 in / f32 out.

    BCEWithLogitsLoss(reduction='none') stable form:
        max(x, 0) - x*y + log1p(exp(-|x|))
    with exp(-|x|) shared between the log1p term and the sigmoid.
    """
    e = jnp.exp(-jnp.abs(x))                               # EUP: exp
    bce = jnp.maximum(x, 0.0) - x * y + jnp.log1p(e)       # EUP: log1p
    denom = 1.0 + e
    if in_kernel:
        r = pl.reciprocal(denom, approx=True)              # EUP: vrcp (no VALU refine)
    else:
        r = 1.0 / denom
    pred_prob = jnp.where(x >= 0.0, r, e * r)              # sigmoid(x) via e
    d = jnp.abs(y - pred_prob)
    if gamma == 1.5:
        mod = d * jnp.sqrt(d)                              # EUP: sqrt
    elif gamma == 2.0:
        mod = d * d
    elif gamma == 1.0:
        mod = d
    else:
        mod = jnp.power(d, gamma)                          # generic fallback
    # y*alpha + (1-y)*(1-alpha) == y*(2*alpha-1) + (1-alpha): one fused mul-add
    alpha_factor = y * (2.0 * alpha - 1.0) + (1.0 - alpha)
    return bce * (alpha_factor * mod)


def _qfocal_reduce_kernel(pred_ref, true_ref, partial_ref, *, gamma, alpha,
                          block_rows):
    x = pred_ref[...].astype(jnp.float32)
    y = true_ref[...].astype(jnp.float32)
    loss = _qfocal_elementwise(x, y, gamma, alpha, in_kernel=True)
    # (block_rows, 128) -> (8, 128) partial sum: pure vreg-wide VPU adds,
    # no per-step cross-lane reduce, no loop-carried scalar dependency.
    partial_ref[...] = jnp.sum(loss.reshape(block_rows // 8, 8, LANES), axis=0)


def _qfocal_map_kernel(pred_ref, true_ref, out_ref, *, gamma, alpha):
    x = pred_ref[...].astype(jnp.float32)
    y = true_ref[...].astype(jnp.float32)
    out_ref[...] = _qfocal_elementwise(x, y, gamma, alpha,
                                       in_kernel=True).astype(out_ref.dtype)


def _split_main(n, max_block_rows):
    """Pick (block_rows, num_blocks, main_rows) for the block-aligned prefix.

    Guarantees num_blocks >= 2 whenever >= 16 full lane-rows exist (so the
    'parallel' grid axis can shard across both v7x TensorCores), and never
    pads: the remainder (< 1 block) is handled outside the kernel.
    """
    rows_total = n // LANES
    if rows_total >= 16:
        block_rows = min(max_block_rows, (rows_total // 2) // 8 * 8)
        block_rows = max(block_rows, 8)
    elif rows_total >= 8:
        block_rows = 8
    else:
        return 0, 0, 0
    num_blocks = rows_total // block_rows
    main_rows = num_blocks * block_rows
    return block_rows, num_blocks, main_rows


def _compiler_params():
    return pltpu.CompilerParams(
        dimension_semantics=("parallel",),
        vmem_limit_bytes=VMEM_LIMIT_BYTES,
    )


def qfocal_loss(pred, true, gamma=1.5, alpha=0.25, reduction="mean"):
    """Quality focal loss with BCE-with-logits inner loss (forward only)."""
    assert pred.shape == true.shape
    gamma = float(gamma)
    alpha = float(alpha)
    n = pred.size
    pf = pred.reshape(-1)
    tf = true.reshape(-1)

    if reduction in ("mean", "sum"):
        block_rows, num_blocks, main_rows = _split_main(n, REDUCE_MAX_BLOCK_ROWS)
        n_main = main_rows * LANES

        total = jnp.float32(0.0)
        if num_blocks > 0:
            kernel = functools.partial(
                _qfocal_reduce_kernel, gamma=gamma, alpha=alpha,
                block_rows=block_rows)
            partials = pl.pallas_call(
                kernel,
                out_shape=jax.ShapeDtypeStruct((num_blocks * 8, LANES),
                                               jnp.float32),
                grid_spec=pltpu.PrefetchScalarGridSpec(
                    num_scalar_prefetch=0,
                    grid=(num_blocks,),
                    in_specs=[
                        pl.BlockSpec((block_rows, LANES), lambda i: (i, 0)),
                        pl.BlockSpec((block_rows, LANES), lambda i: (i, 0)),
                    ],
                    out_specs=pl.BlockSpec((8, LANES), lambda i: (i, 0)),
                ),
                compiler_params=_compiler_params(),
            )(pf[:n_main].reshape(main_rows, LANES),
              tf[:n_main].reshape(main_rows, LANES))
            total = total + jnp.sum(partials)

        if n_main < n:
            # Ragged tail (< 1 block): plain-JAX fused elementwise + sum.
            xt = pf[n_main:].astype(jnp.float32)
            yt = tf[n_main:].astype(jnp.float32)
            total = total + jnp.sum(
                _qfocal_elementwise(xt, yt, gamma, alpha, in_kernel=False))

        if reduction == "mean":
            return total / jnp.float32(n)
        return total

    elif reduction == "none":
        out_dtype = pred.dtype
        block_rows, num_blocks, main_rows = _split_main(n, MAP_MAX_BLOCK_ROWS)
        n_main = main_rows * LANES

        pieces = []
        if num_blocks > 0:
            kernel = functools.partial(
                _qfocal_map_kernel, gamma=gamma, alpha=alpha)
            main_out = pl.pallas_call(
                kernel,
                out_shape=jax.ShapeDtypeStruct((main_rows, LANES), out_dtype),
                grid_spec=pltpu.PrefetchScalarGridSpec(
                    num_scalar_prefetch=0,
                    grid=(num_blocks,),
                    in_specs=[
                        pl.BlockSpec((block_rows, LANES), lambda i: (i, 0)),
                        pl.BlockSpec((block_rows, LANES), lambda i: (i, 0)),
                    ],
                    out_specs=pl.BlockSpec((block_rows, LANES),
                                           lambda i: (i, 0)),
                ),
                compiler_params=_compiler_params(),
            )(pf[:n_main].reshape(main_rows, LANES),
              tf[:n_main].reshape(main_rows, LANES))
            pieces.append(main_out.reshape(-1))

        if n_main < n:
            xt = pf[n_main:].astype(jnp.float32)
            yt = tf[n_main:].astype(jnp.float32)
            pieces.append(
                _qfocal_elementwise(xt, yt, gamma, alpha,
                                    in_kernel=False).astype(out_dtype))

        out_flat = pieces[0] if len(pieces) == 1 else jnp.concatenate(pieces)
        return out_flat.reshape(pred.shape)

    else:
        raise ValueError(f"unknown reduction: {reduction}")


def _qfocal_ref(pred, true, gamma=1.5, alpha=0.25, reduction="mean"):
    x = pred.astype(jnp.float32)
    y = true.astype(jnp.float32)
    bce = jnp.maximum(x, 0.0) - x * y + jnp.log1p(jnp.exp(-jnp.abs(x)))
    p = jax.nn.sigmoid(x)
    loss = bce * (y * alpha + (1 - y) * (1 - alpha)) * jnp.abs(y - p) ** gamma
    if reduction == "mean":
        return loss.mean()
    elif reduction == "sum":
        return loss.sum()
    return loss


if __name__ == "__main__":
    # TODO(synk): forward only — no custom_vjp / backward kernel (d|y-p|^1.5 is
    # singular at y==p and would need epsilon handling for training).
    key = jax.random.PRNGKey(0)
    k1, k2 = jax.random.split(key)
    # NCHW: batch=2, channels=4, spatial=16x16
    pred = jax.random.normal(k1, (2, 4, 16, 16), dtype=jnp.float32)
    true = jax.random.uniform(k2, (2, 4, 16, 16), dtype=jnp.float32)  # soft targets

    # Tolerances account for the EUP approx reciprocal in the in-kernel sigmoid.
    RTOL, ATOL = 5e-3, 1e-4

    out = qfocal_loss(pred, true, gamma=1.5, alpha=0.25, reduction="mean")
    out = jax.block_until_ready(out)
    ref = _qfocal_ref(pred, true, gamma=1.5, alpha=0.25, reduction="mean")
    assert jnp.allclose(out, ref, rtol=RTOL, atol=ATOL), (out, ref)

    out_s = jax.block_until_ready(qfocal_loss(pred, true, reduction="sum"))
    ref_s = _qfocal_ref(pred, true, reduction="sum")
    assert jnp.allclose(out_s, ref_s, rtol=RTOL, atol=1e-2), (out_s, ref_s)

    out_n = jax.block_until_ready(qfocal_loss(pred, true, reduction="none"))
    ref_n = _qfocal_ref(pred, true, reduction="none")
    assert out_n.shape == pred.shape and out_n.dtype == pred.dtype
    assert jnp.allclose(out_n, ref_n, rtol=RTOL, atol=1e-3), "none mismatch"

    # Non-block-multiple size: Pallas handles the aligned prefix, JAX the tail.
    pred2 = jax.random.normal(k1, (3, 5, 7, 11), dtype=jnp.float32)
    true2 = jax.random.uniform(k2, (3, 5, 7, 11), dtype=jnp.float32)
    out2 = jax.block_until_ready(qfocal_loss(pred2, true2, reduction="mean"))
    ref2 = _qfocal_ref(pred2, true2, reduction="mean")
    assert jnp.allclose(out2, ref2, rtol=RTOL, atol=ATOL), (out2, ref2)

    print("KERNEL_OK")
</pallas_src>

<mosaic_0001>
module attributes {stable_mosaic.version = 11 : i64} {
  func.func @_qfocal_reduce_kernel(%arg0: i32, %arg1: memref<8x128xf32, #tpu.memory_space<vmem>>, %arg2: memref<8x128xf32, #tpu.memory_space<vmem>>, %arg3: memref<8x128xf32, #tpu.memory_space<vmem>>) attributes {dimension_semantics = [#tpu.dimension_semantics<parallel>], iteration_bounds = array<i64: 2>, scalar_prefetch = 0 : i64, scratch_operands = 0 : i64, tpu.core_type = #tpu.core_type<tc>, window_params = [{transform_indices = @transform_0, window_bounds = array<i64: 8, 128>}, {transform_indices = @transform_1, window_bounds = array<i64: 8, 128>}, {transform_indices = @transform_2, window_bounds = array<i64: 8, 128>}]} {
    %c0 = arith.constant 0 : index
    %c0_0 = arith.constant 0 : index
    %0 = vector.load %arg1[%c0, %c0_0] : memref<8x128xf32, #tpu.memory_space<vmem>>, vector<8x128xf32>
    %c0_1 = arith.constant 0 : index
    %c0_2 = arith.constant 0 : index
    %1 = vector.load %arg2[%c0_1, %c0_2] : memref<8x128xf32, #tpu.memory_space<vmem>>, vector<8x128xf32>
    %2 = math.absf %0 : vector<8x128xf32>
    %cst = arith.constant 0.000000e+00 : f32
    %3 = vector.broadcast %cst : f32 to vector<8x128xf32>
    %4 = arith.subf %3, %2 : vector<8x128xf32>
    %5 = math.exp %4 : vector<8x128xf32>
    %cst_3 = arith.constant 0.000000e+00 : f32
    %6 = vector.broadcast %cst_3 : f32 to vector<8x128xf32>
    %7 = arith.maximumf %0, %6 : vector<8x128xf32>
    %8 = arith.mulf %0, %1 : vector<8x128xf32>
    %9 = arith.subf %7, %8 : vector<8x128xf32>
    %10 = math.log1p %5 : vector<8x128xf32>
    %11 = arith.addf %9, %10 : vector<8x128xf32>
    %cst_4 = arith.constant 1.000000e+00 : f32
    %12 = vector.broadcast %cst_4 : f32 to vector<8x128xf32>
    %13 = arith.addf %12, %5 : vector<8x128xf32>
    %14 = tpu.reciprocal %13 {approx = true} : vector<8x128xf32> -> vector<8x128xf32>
    %cst_5 = arith.constant 0.000000e+00 : f32
    %15 = vector.broadcast %cst_5 : f32 to vector<8x128xf32>
    %16 = arith.cmpf oge, %0, %15 : vector<8x128xf32>
    %17 = arith.mulf %5, %14 : vector<8x128xf32>
    %18 = arith.select %16, %14, %17 : vector<8x128xi1>, vector<8x128xf32>
    %19 = arith.subf %1, %18 : vector<8x128xf32>
    %20 = math.absf %19 : vector<8x128xf32>
    %21 = math.sqrt %20 : vector<8x128xf32>
    %22 = arith.mulf %20, %21 : vector<8x128xf32>
    %cst_6 = arith.constant -5.000000e-01 : f32
    %23 = vector.broadcast %cst_6 : f32 to vector<8x128xf32>
    %24 = arith.mulf %1, %23 : vector<8x128xf32>
    %cst_7 = arith.constant 7.500000e-01 : f32
    %25 = vector.broadcast %cst_7 : f32 to vector<8x128xf32>
    %26 = arith.addf %24, %25 : vector<8x128xf32>
    %27 = arith.mulf %26, %22 : vector<8x128xf32>
    %28 = arith.mulf %11, %27 : vector<8x128xf32>
    %29 = vector.shape_cast %28 : vector<8x128xf32> to vector<1x8x128xf32>
    %cst_8 = arith.constant dense<0.000000e+00> : vector<8x128xf32>
    %30 = vector.multi_reduction <add>, %29, %cst_8 [0] : vector<1x8x128xf32> to vector<8x128xf32>
    %c0_9 = arith.constant 0 : index
    %c0_10 = arith.constant 0 : index
    %31 = vector.load %arg3[%c0_9, %c0_10] : memref<8x128xf32, #tpu.memory_space<vmem>>, vector<8x128xf32>
    tpu.vector_store %arg3[%c0_9, %c0_10], %30 {strides = array<i32>} : memref<8x128xf32, #tpu.memory_space<vmem>>, vector<8x128xf32>,
    return
  }
  func.func @transform_0(%arg0: i32) -> (i32, i32) {
    %c0_i32 = arith.constant 0 : i32
    %c0_i32_0 = arith.constant 0 : i32
    return %arg0, %c0_i32 : i32, i32
  }
  func.func @transform_1(%arg0: i32) -> (i32, i32) {
    %c0_i32 = arith.constant 0 : i32
    %c0_i32_0 = arith.constant 0 : i32
    return %arg0, %c0_i32 : i32, i32
  }
  func.func @transform_2(%arg0: i32) -> (i32, i32) {
    %c0_i32 = arith.constant 0 : i32
    %c0_i32_0 = arith.constant 0 : i32
    return %arg0, %c0_i32 : i32, i32
  }
}

</mosaic_0001>

<bundles_post_ra>
// kernel: tpu_custom_call.1
= control target key start
LH: loop header
LB: loop body
LE: loop exit
PB: predicated region body
PF: predicated region fallthrough
CT: control target
= control target key end

     0   :  { %7 = vsyncpa [#allocation3], 0  ;;  %s740_s0 = inlined_call_operand.hbm [shape: f32[16,128], index: 0, kind: input, shape index: {}]   ;;  %s741_s1 = inlined_call_operand.hbm [shape: f32[16,128], index: 1, kind: input, shape index: {}]   ;;  %s742_s2 = inlined_call_operand.hbm [shape: f32[16,128], index: 2, kind: output, shape index: {}]  }
   0x1   :  { %9 = vsyncpa [#allocation3 + $0x1], 0 }
   0x2   :  { %10 = vsyncpa [#allocation6], 0 }
   0x3   :  { %12 = vsyncpa [#allocation6 + $0x1], 0 }
   0x4   :  { %13 = vsyncpa [#allocation4], 0 }
   0x5   :  { %15 = vsyncpa [#allocation4 + $0x1], 0  ;;  %s575_s9 = smov 0   ;;  %s577_s10 = smov 0  }
   0x6   :  { %s579_s11 = smov 0   ;;  %s581_s12 = smov 0  }
   0x7 LB: > { %s596_s13 = sadd.s32 4294967295, %s558_s12   ;;  %s354_s14 = sadd.s32 4294967294, %s558_s12   ;;  %s558_s12 = sphi %s581_s12, %s753_s12   ;;  %s554_s11 = sphi %s579_s11, %s752_s11   ;;  %s550_s10 = sphi %s577_s10, %s751_s10   ;;  %s546_s9 = sphi %s575_s9, %s750_s9  }
   0x8   : > { %s600_s15 = sadd.s32 1, %s558_s12   ;;  %s28_s16 = sadd.s32 1, %s554_s11 }
   0x9   : > { %s25_s17 = ssub.s32 %s558_s12, %s600_s15  ;;  %p35_p0 = scmp.ne.s32.totalorder %s554_s11, %s550_s10 }
   0xa   : > { %p26_p1 = scmp.eq.s32.totalorder %s25_s17, 0  ;;  %p36_p2 = scmp.eq.s32.totalorder %s558_s12, 0 }
   0xb   : > { %p41_p3 = scmp.ne.s32.totalorder %s550_s10, %s546_s9  ;;  %p42_p4 = scmp.eq.s32.totalorder %s596_s13, 0 }
   0xc   : > { %s612_s18 = scalar_select %p26_p1, %s554_s11, %s28_s16  }
   0xd   : > { %p614_p5 = por %p36_p2, %p35_p0  ;;  %p618_p6 = por %p42_p4, %p41_p3 }
   0xe   : > { %p91_p7 = scmp.eq.s32.totalorder %s596_s13, 1  ;;  %p97_p8 = scmp.eq.s32.totalorder %s354_s14, 1 }
   0xf   : > { %p386_p10 = scmp.lt.s32.totalorder %s558_s12, 2  ;;  %s634_s23 = sand.u32 1, %s554_s11  }
  0x10   : > { %p625_p11 = por %p91_p7, %p35_p0  ;;  %p629_p12 = por %p97_p8, %p41_p3 }
  0x11   : > { %s358_s24 = sshll.u32 %s558_s12, 3  ;;  %s357_s25 = sshll.u32 %s634_s23, 3 }
  0x12   : > { %s125_s28 = scalar_lea.hbm %s740_s0, %s358_s24  ;;  %s121_s30 = scalar_lea.vmem [#allocation2], %s357_s25 }
  0x13   : > { %s127_s29 = sshll.u32 %s125_s28, 4  ;;  %s129_s3 = sshll.u32 %s121_s30, 4  ;;  %s128_s29 = int_to_ptr.hbm [resolvable:$true] %s127_s29  ;;  %s130_s3 = int_to_ptr.vmem [resolvable:$true] %s129_s3 }
  0x14   : > { %p643_p13 = pnand %p386_p10, %p614_p5  ;;  %p361_p0 = scmp.ge.s32.totalorder %s558_s12, 1 }
  0x15   : > { %p153_p1 = scmp.lt.s32.totalorder %s558_s12, 3  ;;  %s118_s5 = scalar_lea.sflag [#allocation3], %s634_s23 }
  0x16   : > { %s428_s6 = sshra.s32 %s128_s29, 4  ;;  %p432_p3 = pneg %p643_p13  ;;  %s429_s6 = int_to_ptr.hbm [resolvable:$true] %s428_s6 }
  0x17   : > { %s430_s7 = scalar_lea.hbm %s429_s6, 8  ;;  %s435_s16 = scalar_lea.hbm %s740_s0, 16 }
  0x18   : > { %p431_p2 = scmp.ne.s32.totalorder %s429_s6, %s430_s7  ;;  %p436_p5 = scmp.lt.s32.totalorder %s429_s6, %s740_s0 }
  0x19   : > { %p437_p8 = scmp.lt.s32.totalorder %s435_s16, %s430_s7 }
  0x1a   : > { %p433_p4 = pnand %p432_p3, %p431_p2 }
  0x1b   : > { %p438_p10 = por %p437_p8, %p436_p5 }
  0x1c   : > { %p434_p7 = pneg %p433_p4 }
  0x1e   : > { %p439_p9 = pnand %p438_p10, %p434_p7 }
  0x20   : > { %442 = shalt.err (!%p439_p9)
}
  0x21   : > { %378 = dma.hbm_to_vmem [thread:$0]  (!%p643_p13), %s128_s29, 128, %s130_s3, %s118_s5  }
  0x22   : > { %p667_p2 = pnand %p361_p0, %p153_p1  ;;  %s144_s30 = scalar_lea.hbm %s741_s1, %s358_s24 }
  0x23   : > { %s146_s6 = sshll.u32 %s144_s30, 4  ;;  %s140_s7 = scalar_lea.vmem [#allocation5], %s357_s25  ;;  %s147_s6 = int_to_ptr.hbm [resolvable:$true] %s146_s6 }
  0x24   : > { %s148_s8 = sshll.u32 %s140_s7, 4  ;;  %s137_s14 = scalar_lea.sflag [#allocation6], %s634_s23  ;;  %s149_s8 = int_to_ptr.vmem [resolvable:$true] %s148_s8 }
  0x25   : > { %s458_s16 = sshra.s32 %s147_s6, 4  ;;  %s465_s5 = scalar_lea.hbm %s741_s1, 16  ;;  %s459_s16 = int_to_ptr.hbm [resolvable:$true] %s458_s16 }
  0x26   : > { %s460_s17 = scalar_lea.hbm %s459_s16, 8  ;;  %p466_p4 = scmp.lt.s32.totalorder %s459_s16, %s741_s1 }
  0x27   : > { %p461_p9 = scmp.ne.s32.totalorder %s459_s16, %s460_s17  ;;  %p467_p7 = scmp.lt.s32.totalorder %s465_s5, %s460_s17 }
  0x29   : > { %p463_p0 = pnand %p461_p9, %p432_p3  ;;  %p468_p5 = por %p467_p7, %p466_p4 }
  0x2b   : > { %p464_p1 = pneg %p463_p0 }
  0x2d   : > { %p469_p8 = pnand %p468_p5, %p464_p1 }
  0x2f   : > { %472 = shalt.err (!%p469_p8)
}
  0x30   : > { %381 = dma.hbm_to_vmem [thread:$0]  (!%p643_p13), %s147_s6, 128, %s149_s8, %s137_s14  }
  0x31   : > { %157 = sbr.rel (%p667_p2) target bundleno = 117 (0x75), region = 28  ;;  %s689_s23 = sand.u32 (!%p667_p2), 1, %s550_s10  }
  0x32   : > { %s692_s25 = sshll.u32 (!%p667_p2), %s689_s23, 3  ;;  %s160_s27 = scalar_lea.sflag (!%p667_p2), [#allocation3], %s689_s23 }
  0x33   : > { %s163_s28 = scalar_lea.vmem (!%p667_p2), [#allocation2], %s692_s25 }
  0x36   : > { %533 = dma.done.wait (%p618_p6), %s160_s27, 128  }
  0x37   : > { %535 = vsyncadd (%p618_p6), %s160_s27, 4294967168  ;;  %s170_s4 = scalar_lea.sflag [#allocation6], %s689_s23  ;;  %s173_s26 = scalar_lea.vmem [#allocation5], %s692_s25 }
  0x38   : > { %537 = dma.done.wait (%p618_p6), %s170_s4, 128  }
  0x39   : > { %539 = vsyncadd (%p618_p6), %s170_s4, 4294967168  ;;  %v200_v0 = vld [vmem:[%s163_s28] sm:$0xff]  ;;  %v201_v7 = vld [vmem:[%s173_s26] sm:$0xff]  ;;  %s366_s20 = sshll.u32 %s596_s13, 3  ;;  %s199_s8 = scalar_lea.vmem [#allocation7], %s692_s25 }
  0x3a   : > { %v202_v1 = vand.u32 2147483647, %v200_v0  ;;  %vm221_vm0 = vcmp.ge.f32.partialorder %v200_v0, 0.0  ;;  %v206_v20 = vmax.f32 %v200_v0, 0.0  ;;  %v207_v21 = vmul.f32 %v201_v7, %v200_v0  ;;  %s256_s7 = scalar_lea.hbm %s742_s2, %s366_s20  ;;  %s258_s14 = sshll.u32 %s199_s8, 4  ;;  %s259_s14 = int_to_ptr.vmem [resolvable:$true] %s258_s14 }
  0x3b   : > { %v239_v26 = vmul.f32 -0.5, %v201_v7  ;;  %s260_s16 = sshll.u32 %s256_s7, 4  ;;  %s246_s13 = scalar_lea.sflag [#allocation4], %s689_s23  ;;  %s261_s16 = int_to_ptr.hbm [resolvable:$true] %s260_s16 }
  0x3c   : > { %v203_v2 = vsub.f32 0.0, %v202_v1  ;;  %v208_v28 = vsub.f32 %v206_v20, %v207_v21  ;;  %s502_s17 = sshra.s32 %s261_s16, 4  ;;  %s508_s19 = scalar_lea.hbm %s742_s2, 16  ;;  %s503_s17 = int_to_ptr.hbm [resolvable:$true] %s502_s17 }
  0x3d   : > { %v240_v32 = vadd.f32 0.75, %v239_v26  ;;  %s504_s29 = scalar_lea.hbm %s503_s17, 8  ;;  %p509_p10 = scmp.lt.s32.totalorder %s503_s17, %s742_s2 }
  0x3e   : > { %v204_v3 = vmul.f32 1.442695, %v203_v2  ;;  %p505_p6 = scmp.ne.s32.totalorder %s503_s17, %s504_s29  ;;  %p510_p2 = scmp.lt.s32.totalorder %s508_s19, %s504_s29 }
  0x40   : > { %420 = vpow2.f32 %v204_v3  ;;  %p506_p13 = pnand %p505_p6, %p625_p11  ;;  %p511_p9 = por %p510_p2, %p509_p10 }
  0x42   : > { %p507_p3 = pneg %p506_p13 }
  0x44   : > { %p512_p0 = pnand %p511_p9, %p507_p3 }
  0x46   : > { %v421_v4 = vpop.eup %420 }
  0x47   : > { %v209_v5 = vadd.f32 1.0, %v421_v4  ;;  %v212_v13 = vmul.f32 -0.5, %v421_v4  ;;  %v215_v18 = vand.u32 2147483647, %v421_v4 }
  0x49   : > { %422 = vrcp.f32 %v209_v5  ;;  %v213_v16 = vadd.f32 1.0, %v212_v13  ;;  %vm216_vm1 = vcmp.lt.f32.partialorder %v215_v18, 0.0004427343 }
  0x4b   : > { %v214_v24 = vmul.f32 %v421_v4, %v213_v16 }
  0x4f   : > { %v423_v6 = vpop.eup %422 }
  0x50   : > { %v222_v8 = vmul.f32 %v423_v6, %v421_v4 }
  0x52   : > { %v223_v9 = vsel %vm221_vm0, %v423_v6, %v222_v8 }
  0x53   : > { %v224_v10 = vsub.f32 %v201_v7, %v223_v9 }
  0x55   : > { %v225_v11 = vand.u32 2147483647, %v224_v10 }
  0x57   : > { %424 = vrsqrt.f32 %v225_v11  ;;  %vm233_vm2 = vcmp.eq.f32.partialorder %v225_v11, inf  ;;  %v236_v27 = vand.u32 2147483648, %v225_v11  ;;  %vm235_vm3 = vcmp.eq.f32.partialorder %v225_v11, 0.0 }
  0x58   : > { %426 = vlog2.f32 %v209_v5 }
  0x5d   : > { %v425_v12 = vpop.eup %424 }
  0x5e   : > { %v227_v14 = vmul.f32 %v425_v12, %v225_v11  ;;  %v427_v17 = vpop.eup %426 }
  0x5f   : > { %v211_v23 = vmul.f32 0.6931472, %v427_v17 }
  0x60   : > { %v228_v15 = vmul.f32 %v425_v12, %v227_v14 }
  0x61   : > { %v217_v30 = vsel %vm216_vm1, %v214_v24, %v211_v23 }
  0x62   : > { %v229_v19 = vmul.f32 0.5, %v228_v15  ;;  %v218_v34 = vadd.f32 %v217_v30, %v208_v28 }
  0x64   : > { %v230_v22 = vsub.f32 1.5, %v229_v19 }
  0x66   : > { %v231_v25 = vmul.f32 %v425_v12, %v230_v22 }
  0x68   : > { %v232_v29 = vmul.f32 %v231_v25, %v225_v11 }
  0x6a   : > { %v234_v31 = vsel %vm233_vm2, %v225_v11, %v232_v29 }
  0x6b   : > { %v237_v33 = vsel %vm235_vm3, %v236_v27, %v234_v31 }
  0x6c   : > { %v238_v35 = vmul.f32 %v237_v33, %v225_v11 }
  0x6e   : > { %v241_v36 = vmul.f32 %v240_v32, %v238_v35 }
  0x70   : > { %v242_v37 = vmul.f32 %v241_v36, %v218_v34 }
  0x72   : > { %244 = vst [vmem:[%s199_s8] sm:$0xff] %v242_v37 }
  0x73   : > { %515 = shalt.err (!%p512_p0)
}
  0x74   : > { %373 = dma.vmem_to_hbm [thread:$0]  (%p625_p11), %s259_s14, 128, %s261_s16, %s246_s13  }
  0x75 PF: > { %s272_s23 = sand.u32 1, %s546_s9   ;;  %p749_p1 = scmp.ge.s32.totalorder %s558_s12, 2 }
  0x76   : > { %s273_s27 = scalar_lea.sflag [#allocation4], %s272_s23 }
  0x77   : > { %p383_p4 = pnand %p749_p1, %p629_p12 }
  0x79   : > { %p384_p7 = pneg %p383_p4 }
  0x7b   : > { %541 = dma.done.wait (%p384_p7), %s273_s27, 128  }
  0x7c   : > { %543 = vsyncadd (%p384_p7), %s273_s27, 4294967168  ;;  %p18_p5 = scmp.ge.s32.totalorder %s600_s15, 4   ;;  %s750_s9 = smov %s550_s10 }
  0x7d   : > { %s751_s10 = smov %s554_s11  ;;  %s752_s11 = smov %s612_s18 }
  0x7e   : > { %s753_s12 = smov %s600_s15  ;;  %20 = sbr.rel (!%p18_p5) target bundleno = 7 (0x7), region = 86 }
  0x83   :  { %279 = vsyncpa [#allocation3], 1 }
  0x84   :  { %281 = vsyncpa [#allocation3 + $0x1], 1 }
  0x85   :  { %282 = vsyncpa [#allocation6], 1 }
  0x86   :  { %284 = vsyncpa [#allocation6 + $0x1], 1 }
  0x87   :  { %285 = vsyncpa [#allocation4], 1 }
  0x88   :  { %287 = vsyncpa [#allocation4 + $0x1], 1 }

</bundles_post_ra>
